<compile_context>
chip_gen: v7x
topology: tpu7x:2x2x1
jax: 0.10.0
libtpu: 0.0.40
codegen_flags: <defaults>
</compile_context>

<pallas_src>
import math

import jax
import jax.numpy as jnp
from jax import lax
from jax.experimental import pallas as pl
from jax.experimental.pallas import tpu as pltpu


def _conv_linear_kernel(p_ref, wc_ref, bc_ref, wl_ref, bl_ref, o_ref):
    """One batch-block: im2col matmul + ReLU + weighted T-reduction + ReLU.

    p_ref : (tn*T, Cin*K)  im2col patches for `tn` samples
    wc_ref: (Cin*K, Cout)  reshaped conv weight
    bc_ref: (1, Cout)      conv bias
    wl_ref: (T, Cout)      linear weight, pre-broadcast over Cout
    bl_ref: (1, 1)         linear bias
    o_ref : (tn, Cout)     lane-dense output block
    """
    tn, cout = o_ref.shape
    t = wl_ref.shape[0]

    # Conv1d == single MXU matmul over the im2col patches (f32 accumulate).
    y = jnp.dot(p_ref[...], wc_ref[...], preferred_element_type=jnp.float32)
    y = jnp.maximum(y + bc_ref[...], 0.0)                  # (tn*T, Cout), ReLU

    # Linear(48 -> 1): weighted reduction over T on the VPU/XLU (no MXU).
    y = y.reshape(tn, t, cout)                             # split rows back to (n, t)
    z = jnp.sum(y * wl_ref[...][None, :, :], axis=1)       # (tn, Cout)
    o_ref[...] = jnp.maximum(z + bl_ref[...], 0.0).astype(o_ref.dtype)


def convolution_forward(x, w_conv, b_conv, w_lin, b_lin, *, block_n=256):
    """x: (N, Cin, L) -> (N, Cout, 1), matching the PyTorch module."""
    N, Cin, L = x.shape
    Cout, _, K = w_conv.shape
    T = L - K + 1
    if w_lin.shape[1] != T:
        raise ValueError(f"Linear in_features {w_lin.shape[1]} != conv length {T}")

    x = x.astype(jnp.float32)

    # ---- im2col in the wrapper (tiny, XLA handles it) -----------------------
    # patches[n*T + t, c*K + k] = x[n, c, t + k]
    cols = jnp.stack([x[:, :, k:k + T] for k in range(K)], axis=-1)  # (N,Cin,T,K)
    patches = cols.transpose(0, 2, 1, 3).reshape(N * T, Cin * K)     # (N*T, Cin*K)

    # Conv weight as (Cin*K, Cout) with matching (c, k) ordering.
    wc2 = jnp.transpose(w_conv, (1, 2, 0)).reshape(Cin * K, Cout).astype(jnp.float32)
    bc2 = b_conv.reshape(1, Cout).astype(jnp.float32)

    # Linear weight pre-broadcast over Cout so the kernel reduction is a plain
    # elementwise multiply + sublane reduce.
    wl2 = jnp.broadcast_to(w_lin.reshape(T, 1), (T, Cout)).astype(jnp.float32)
    bl2 = b_lin.reshape(1, 1).astype(jnp.float32)

    # ---- grid over the batch (parallel -> uses both TCs on v7x when N grows)
    bn = max(1, min(N, block_n))
    n_blocks = pl.cdiv(N, bn)
    N_pad = n_blocks * bn
    if N_pad != N:  # zero-pad whole samples; padded outputs are sliced off below
        patches = jnp.pad(patches, ((0, (N_pad - N) * T), (0, 0)))

    rows_per_block = bn * T
    out = pl.pallas_call(
        _conv_linear_kernel,
        out_shape=jax.ShapeDtypeStruct((N_pad, Cout), x.dtype),
        grid=(n_blocks,),
        in_specs=[
            pl.BlockSpec((rows_per_block, Cin * K), lambda i: (i, 0)),
            pl.BlockSpec((Cin * K, Cout), lambda i: (0, 0)),
            pl.BlockSpec((1, Cout), lambda i: (0, 0)),
            pl.BlockSpec((T, Cout), lambda i: (0, 0)),
            pl.BlockSpec((1, 1), lambda i: (0, 0)),
        ],
        out_specs=pl.BlockSpec((bn, Cout), lambda i: (i, 0)),
        compiler_params=pltpu.CompilerParams(
            dimension_semantics=("parallel",)),
    )(patches, wc2, bc2, wl2, bl2)

    return out[:N].reshape(N, Cout, 1)


def _reference_forward(x, w_conv, b_conv, w_lin, b_lin):
    """Pure-JAX reference (lax conv) for a correctness cross-check."""
    y = lax.conv_general_dilated(
        x, w_conv, window_strides=(1,), padding='VALID',
        dimension_numbers=('NCH', 'OIH', 'NCH'))
    y = y + b_conv.reshape(1, -1, 1)
    y = jnp.maximum(y, 0.0)
    z = jnp.einsum('nct,ut->ncu', y, w_lin) + b_lin.reshape(1, 1, 1)
    return jnp.maximum(z, 0.0)


if __name__ == "__main__":
    # Shapes implied by the module: Conv1d(16,16,3) then Linear(48,1)
    #   => input length must be 50 so the conv output length is 48.
    N, Cin, Cout, K, L = 2, 16, 16, 3, 50

    key = jax.random.PRNGKey(0)
    kx, kwc, kbc, kwl, kbl = jax.random.split(key, 5)

    x = jax.random.normal(kx, (N, Cin, L), dtype=jnp.float32)

    # Deterministic parameter init (synthetic; PyTorch-like uniform fan-in scaling).
    conv_bound = 1.0 / math.sqrt(Cin * K)
    w_conv = jax.random.uniform(kwc, (Cout, Cin, K), jnp.float32,
                                -conv_bound, conv_bound)
    b_conv = jax.random.uniform(kbc, (Cout,), jnp.float32,
                                -conv_bound, conv_bound)
    lin_bound = 1.0 / math.sqrt(48.0)
    w_lin = jax.random.uniform(kwl, (1, 48), jnp.float32, -lin_bound, lin_bound)
    b_lin = jax.random.uniform(kbl, (1,), jnp.float32, -lin_bound, lin_bound)

    out = convolution_forward(x, w_conv, b_conv, w_lin, b_lin)
    out = jax.block_until_ready(out)
    assert out.shape == (N, Cout, 1), out.shape

    ref = jax.block_until_ready(_reference_forward(x, w_conv, b_conv, w_lin, b_lin))
    assert jnp.allclose(out, ref, atol=1e-3, rtol=1e-3), "mismatch vs reference"

    print("KERNEL_OK")
</pallas_src>

<mosaic_0001>
module attributes {stable_mosaic.version = 11 : i64} {
  func.func @_conv_linear_kernel(%arg0: i32, %arg1: memref<96x48xf32, #tpu.memory_space<vmem>>, %arg2: memref<48x16xf32, #tpu.memory_space<vmem>>, %arg3: memref<1x16xf32, #tpu.memory_space<vmem>>, %arg4: memref<48x16xf32, #tpu.memory_space<vmem>>, %arg5: memref<1x1xf32, #tpu.memory_space<vmem>>, %arg6: memref<2x16xf32, #tpu.memory_space<vmem>>) attributes {dimension_semantics = [#tpu.dimension_semantics<parallel>], iteration_bounds = array<i64: 1>, scalar_prefetch = 0 : i64, scratch_operands = 0 : i64, tpu.core_type = #tpu.core_type<tc>, window_params = [{transform_indices = @transform_0, window_bounds = array<i64: 96, 48>}, {pipeline_mode = #tpu.pipeline_mode<synchronous>, transform_indices = @transform_1, window_bounds = array<i64: 48, 16>}, {pipeline_mode = #tpu.pipeline_mode<synchronous>, transform_indices = @transform_2, window_bounds = array<i64: 1, 16>}, {pipeline_mode = #tpu.pipeline_mode<synchronous>, transform_indices = @transform_3, window_bounds = array<i64: 48, 16>}, {pipeline_mode = #tpu.pipeline_mode<synchronous>, transform_indices = @transform_4, window_bounds = array<i64: 1, 1>}, {transform_indices = @transform_5, window_bounds = array<i64: 2, 16>}]} {
    %c0 = arith.constant 0 : index
    %c0_0 = arith.constant 0 : index
    %0 = vector.load %arg1[%c0, %c0_0] : memref<96x48xf32, #tpu.memory_space<vmem>>, vector<96x48xf32>
    %c0_1 = arith.constant 0 : index
    %c0_2 = arith.constant 0 : index
    %1 = vector.load %arg2[%c0_1, %c0_2] : memref<48x16xf32, #tpu.memory_space<vmem>>, vector<48x16xf32>
    %cst = arith.constant dense<0.000000e+00> : vector<96x16xf32>
    %2 = tpu.matmul %0, %1, %cst {dimension_numbers = #tpu.dot_dimension_numbers<[1], [0], [0], [1], [0, 0, 1, 1], [], []>} : vector<96x48xf32>, vector<48x16xf32>, vector<96x16xf32> -> vector<96x16xf32>
    %c0_3 = arith.constant 0 : index
    %c0_4 = arith.constant 0 : index
    %3 = vector.load %arg3[%c0_3, %c0_4] : memref<1x16xf32, #tpu.memory_space<vmem>>, vector<1x16xf32>
    %4 = vector.broadcast %3 : vector<1x16xf32> to vector<96x16xf32>
    %5 = arith.addf %2, %4 : vector<96x16xf32>
    %cst_5 = arith.constant 0.000000e+00 : f32
    %6 = vector.broadcast %cst_5 : f32 to vector<96x16xf32>
    %7 = arith.maximumf %5, %6 : vector<96x16xf32>
    %8 = vector.shape_cast %7 : vector<96x16xf32> to vector<2x48x16xf32>
    %c0_6 = arith.constant 0 : index
    %c0_7 = arith.constant 0 : index
    %9 = vector.load %arg4[%c0_6, %c0_7] : memref<48x16xf32, #tpu.memory_space<vmem>>, vector<48x16xf32>
    %10 = vector.shape_cast %9 : vector<48x16xf32> to vector<1x48x16xf32>
    %11 = vector.broadcast %10 : vector<1x48x16xf32> to vector<2x48x16xf32>
    %12 = arith.mulf %8, %11 : vector<2x48x16xf32>
    %cst_8 = arith.constant dense<0.000000e+00> : vector<2x16xf32>
    %13 = vector.multi_reduction <add>, %12, %cst_8 [1] : vector<2x48x16xf32> to vector<2x16xf32>
    %c0_9 = arith.constant 0 : index
    %c0_10 = arith.constant 0 : index
    %14 = vector.load %arg5[%c0_9, %c0_10] : memref<1x1xf32, #tpu.memory_space<vmem>>, vector<1x1xf32>
    %15 = vector.broadcast %14 : vector<1x1xf32> to vector<2x16xf32>
    %16 = arith.addf %13, %15 : vector<2x16xf32>
    %cst_11 = arith.constant 0.000000e+00 : f32
    %17 = vector.broadcast %cst_11 : f32 to vector<2x16xf32>
    %18 = arith.maximumf %16, %17 : vector<2x16xf32>
    %c0_12 = arith.constant 0 : index
    %c0_13 = arith.constant 0 : index
    %19 = vector.load %arg6[%c0_12, %c0_13] : memref<2x16xf32, #tpu.memory_space<vmem>>, vector<2x16xf32>
    tpu.vector_store %arg6[%c0_12, %c0_13], %18 {strides = array<i32>} : memref<2x16xf32, #tpu.memory_space<vmem>>, vector<2x16xf32>,
    return
  }
  func.func @transform_0(%arg0: i32) -> (i32, i32) {
    %c0_i32 = arith.constant 0 : i32
    %c0_i32_0 = arith.constant 0 : i32
    return %arg0, %c0_i32 : i32, i32
  }
  func.func @transform_1(%arg0: i32) -> (i32, i32) {
    %c0_i32 = arith.constant 0 : i32
    %c0_i32_0 = arith.constant 0 : i32
    %c0_i32_1 = arith.constant 0 : i32
    return %c0_i32, %c0_i32_0 : i32, i32
  }
  func.func @transform_2(%arg0: i32) -> (i32, i32) {
    %c0_i32 = arith.constant 0 : i32
    %c0_i32_0 = arith.constant 0 : i32
    %c0_i32_1 = arith.constant 0 : i32
    return %c0_i32, %c0_i32_0 : i32, i32
  }
  func.func @transform_3(%arg0: i32) -> (i32, i32) {
    %c0_i32 = arith.constant 0 : i32
    %c0_i32_0 = arith.constant 0 : i32
    %c0_i32_1 = arith.constant 0 : i32
    return %c0_i32, %c0_i32_0 : i32, i32
  }
  func.func @transform_4(%arg0: i32) -> (i32, i32) {
    %c0_i32 = arith.constant 0 : i32
    %c0_i32_0 = arith.constant 0 : i32
    %c0_i32_1 = arith.constant 0 : i32
    return %c0_i32, %c0_i32_0 : i32, i32
  }
  func.func @transform_5(%arg0: i32) -> (i32, i32) {
    %c0_i32 = arith.constant 0 : i32
    %c0_i32_0 = arith.constant 0 : i32
    return %arg0, %c0_i32 : i32, i32
  }
}

</mosaic_0001>

<bundles_post_ra>
// kernel: tpu_custom_call.1
= control target key start
LH: loop header
LB: loop body
LE: loop exit
PB: predicated region body
PF: predicated region fallthrough
CT: control target
= control target key end

     0   :  { %s563_s0 = inlined_call_operand.vmem [shape: f32[96,48], index: 0, kind: input, shape index: {}]   ;;  %s564_s1 = inlined_call_operand.vmem [shape: f32[48,16], index: 1, kind: input, shape index: {}]   ;;  %s565_s2 = inlined_call_operand.vmem [shape: f32[1,16], index: 2, kind: input, shape index: {}]   ;;  %s566_s3 = inlined_call_operand.vmem [shape: f32[48,16], index: 3, kind: input, shape index: {}]   ;;  %s567_s4 = inlined_call_operand.<no memory space> [shape: f32[1,1], index: 4, kind: input, shape index: {}]   ;;  %s568_s5 = inlined_call_operand.hbm [shape: f32[2,16], index: 5, kind: output, shape index: {}]  }
   0x1   :  { %v10_v0 = vstv %s567_s4 }
   0x2   :  { %11 = vst [vmem:[#allocation2] sm:$0x1] %v10_v0 }
   0x3   :  { %v35_v1 = vld [vmem:[%s564_s1] sm:$0xff]  ;;  %v36_v2 = vld [vmem:[%s564_s1 + $0x8] sm:$0xff]  ;;  %v37_v3 = vld [vmem:[%s564_s1 + $0x10] sm:$0xff]  ;;  %v417_v6 = vmov 0   ;;  %vm48_vm0 = vcmask 392192  }
   0x4   :  { %v372_v4 = vpack.c.bf16 %v36_v2, %v35_v1  ;;  %v38_v5 = vld [vmem:[%s564_s1 + $0x18] sm:$0xff]  ;;  %392 = vset.pattern.permute.xlu0 %v417_v6  ;;  %v39_v8 = vld [vmem:[%s564_s1 + $0x20] sm:$0xff]  ;;  %v40_v9 = vld [vmem:[%s564_s1 + $0x28] sm:$0xff] }
   0x5   :  { %v376_v7 = vpack.c.bf16 %v38_v5, %v37_v3  ;;  %v23_v10 = vld [vmem:[%s563_s0] sm:$0xff]  ;;  %v29_v11 = vld [vmem:[%s563_s0 + $0x30] sm:$0xff]  ;;  %v380_v12 = vpack.c.bf16 %v40_v9, %v39_v8 }
   0x6   :  { %373 = vmatprep.subr.bf16.mxu0 %v372_v4  ;;  %384 = vmatprep.subr.bf16.mxu1 %v372_v4 }
   0x7   :  { %375 = vmatpush3.bf16.msra.mxu0 %v372_v4  ;;  %387 = vmatpush3.bf16.msra.mxu1 %v372_v4 }
   0x8   :  { %377 = vmatprep.subr.bf16.mxu0 %v376_v7  ;;  %385 = vmatprep.subr.bf16.mxu1 %v376_v7 }
   0x9   :  { %354 = vmatprep.mubr.msk.f32.mxu0 %vm48_vm0, %v23_v10  ;;  %363 = vmatprep.mubr.msk.f32.mxu1 %vm48_vm0, %v29_v11  ;;  %v323_v13 = vld [vmem:[#allocation2] ss:$0 sm:$0xff] }
   0xa   :  { %12 = vsyncpa [#allocation4], 0  ;;  %282 = vperm.xlu0 %392, %v323_v13   ;;  %v24_v14 = vld [vmem:[%s563_s0 + $0x8] sm:$0xff]  ;;  %v30_v15 = vld [vmem:[%s563_s0 + $0x38] sm:$0xff]  ;;  %vm240_vm1 = vcmask 130048   ;;  %vm291_vm2 = vcmask 1041409  }
   0xb   :  { %379 = vmatpush3.bf16.msra.mxu0 %v376_v7  ;;  %388 = vmatpush3.bf16.msra.mxu1 %v376_v7  ;;  %v25_v16 = vld [vmem:[%s563_s0 + $0x10] sm:$0xff]  ;;  %v31_v17 = vld [vmem:[%s563_s0 + $0x40] sm:$0xff]  ;;  %v26_v18 = vld [vmem:[%s563_s0 + $0x18] sm:$0xff]  ;;  %vm294_vm3 = vcmask 123904  }
   0xc   :  { %381 = vmatprep.subr.bf16.mxu0 %v380_v12  ;;  %386 = vmatprep.subr.bf16.mxu1 %v380_v12  ;;  %v32_v19 = vld [vmem:[%s563_s0 + $0x48] sm:$0xff]  ;;  %v27_v20 = vld [vmem:[%s563_s0 + $0x20] sm:$0xff]  ;;  %v33_v21 = vld [vmem:[%s563_s0 + $0x50] sm:$0xff] }
   0xd   :  { %v28_v22 = vld [vmem:[%s563_s0 + $0x28] sm:$0xff]  ;;  %v34_v23 = vld [vmem:[%s563_s0 + $0x58] sm:$0xff]  ;;  %v310_v24 = vld [vmem:[%s565_s2] ss:$0 sm:$0xff] }
   0xe   :  { %v223_v31 = vld [vmem:[%s566_s3 + $0x8] sm:$0xff]  ;;  %v222_v36 = vld [vmem:[%s566_s3] sm:$0xff]  ;;  %v225_v49 = vld [vmem:[%s566_s3 + $0x18] sm:$0xff] }
   0xf   :  { %383 = vmatpush3.bf16.msra.mxu0 %v380_v12  ;;  %389 = vmatpush3.bf16.msra.mxu1 %v380_v12  ;;  %v224_v56 = vld [vmem:[%s566_s3 + $0x10] sm:$0xff]  ;;  %v227_v9 = vld [vmem:[%s566_s3 + $0x28] sm:$0xff] }
  0x12   :  { %355 = vmatmul.mubr.msk.f32.vlgmr.msra.gmra.mrb[0].mxu0 %vm48_vm0, %v24_v14  ;;  %364 = vmatmul.mubr.msk.f32.vlgmr.msra.gmra.mrb[0].mxu1 %vm48_vm0, %v30_v15 }
  0x13   :  { %357 = vmatprep.mubr.msk.f32.mxu0 %vm48_vm0, %v25_v16  ;;  %366 = vmatprep.mubr.msk.f32.mxu1 %vm48_vm0, %v31_v17  ;;  %v226_v16 = vld [vmem:[%s566_s3 + $0x20] sm:$0xff]  ;;  %s418_s3 = smov [#allocation3]  }
  0x14   :  { %s302_s14 = sshll.u32 %s418_s3, 4  ;;  %s303_s14 = int_to_ptr.vmem [resolvable:$true] %s302_s14 }
  0x15   :  { %s393_s15 = scalar_lea.vmem %s303_s14, 32  ;;  %p398_p1 = scmp.lt.s32.totalorder %s303_s14, %s303_s14 }
  0x16   :  { %358 = vmatmul.mubr.msk.f32.gmra.mrb[2].mxu0 %vm48_vm0, %v26_v18  ;;  %367 = vmatmul.mubr.msk.f32.gmra.mrb[2].mxu1 %vm48_vm0, %v32_v19  ;;  %p394_p0 = scmp.ne.s32.totalorder %s303_s14, %s393_s15  ;;  %p399_p2 = scmp.lt.s32.totalorder %s393_s15, %s393_s15 }
  0x17   :  { %360 = vmatprep.mubr.msk.f32.mxu0 %vm48_vm0, %v27_v20  ;;  %369 = vmatprep.mubr.msk.f32.mxu1 %vm48_vm0, %v33_v21 }
  0x18   :  { %p400_p3 = por %p399_p2, %p398_p1 }
  0x1a   :  { %361 = vmatmul.mubr.msk.f32.gmra.mrb[4].mxu0 %vm48_vm0, %v28_v22  ;;  %370 = vmatmul.mubr.msk.f32.gmra.mrb[4].mxu1 %vm48_vm0, %v34_v23  ;;  %p401_p4 = pnand %p400_p3, %p394_p0 }
  0xe5   :  { %v356_v25 = vpop.f32.mrb[0].mxu0  ;;  %v365_v26 = vpop.f32.mrb[0].mxu1 }
  0xe6   :  { %v157_v27 = vadd.f32 %v356_v25, %v310_v24  ;;  %v187_v28 = vadd.f32 %v365_v26, %v310_v24  ;;  %v151_v29 = vpop.f32.mrb[1].mxu0  ;;  %v181_v30 = vpop.f32.mrb[1].mxu1 }
  0xe7   :  { %v152_v32 = vadd.f32 %v310_v24, %v151_v29  ;;  %v182_v33 = vadd.f32 %v310_v24, %v181_v30 }
  0xe8   :  { %v211_v34 = vmax.f32 %v157_v27, 0.0  ;;  %v217_v35 = vmax.f32 %v187_v28, 0.0 }
  0xe9   :  { %v210_v37 = vmax.f32 %v152_v32, 0.0  ;;  %v216_v38 = vmax.f32 %v182_v33, 0.0  ;;  %v359_v39 = vpop.f32.mrb[2].mxu0  ;;  %v368_v40 = vpop.f32.mrb[2].mxu1 }
  0xea   :  { %v229_v41 = vmul.f32 %v223_v31, %v211_v34  ;;  %v235_v42 = vmul.f32 %v223_v31, %v217_v35  ;;  %v167_v43 = vadd.f32 %v359_v39, %v310_v24  ;;  %v197_v44 = vadd.f32 %v368_v40, %v310_v24  ;;  %v161_v45 = vpop.f32.mrb[3].mxu0  ;;  %v191_v46 = vpop.f32.mrb[3].mxu1 }
  0xeb   :  { %v228_v47 = vmul.f32 %v222_v36, %v210_v37  ;;  %v234_v48 = vmul.f32 %v222_v36, %v216_v38  ;;  %v162_v50 = vadd.f32 %v310_v24, %v161_v45  ;;  %v192_v51 = vadd.f32 %v310_v24, %v191_v46 }
  0xec   :  { %v242_v52 = vsel %vm240_vm1, %v229_v41, 0.0  ;;  %v259_v53 = vsel %vm240_vm1, %v235_v42, 0.0  ;;  %v213_v54 = vmax.f32 %v167_v43, 0.0  ;;  %v219_v55 = vmax.f32 %v197_v44, 0.0 }
  0xed   :  { %v241_v57 = vsel %vm240_vm1, %v228_v47, 0.0  ;;  %v258_v58 = vsel %vm240_vm1, %v234_v48, 0.0  ;;  %v212_v59 = vmax.f32 %v162_v50, 0.0  ;;  %v218_v60 = vmax.f32 %v192_v51, 0.0  ;;  %v362_v61 = vpop.f32.mrb[4].mxu0  ;;  %v371_v62 = vpop.f32.mrb[4].mxu1 }
  0xee   :  { %v243_v63 = vadd.f32 %v242_v52, %v241_v57  ;;  %v260_v0 = vadd.f32 %v259_v53, %v258_v58  ;;  %v231_v1 = vmul.f32 %v225_v49, %v213_v54  ;;  %v237_v2 = vmul.f32 %v225_v49, %v219_v55  ;;  %v171_v3 = vpop.f32.mrb[5].mxu0  ;;  %v201_v4 = vpop.f32.mrb[5].mxu1 }
  0xef   :  { %v230_v5 = vmul.f32 %v224_v56, %v212_v59  ;;  %v236_v6 = vmul.f32 %v224_v56, %v218_v60  ;;  %v177_v7 = vadd.f32 %v362_v61, %v310_v24  ;;  %v207_v8 = vadd.f32 %v371_v62, %v310_v24  ;;  %v283_v47 = vpop.permute.xlu0 %282 }
  0xf0   :  { %v172_v10 = vadd.f32 %v310_v24, %v171_v3  ;;  %v202_v11 = vadd.f32 %v310_v24, %v201_v4  ;;  %v246_v21 = vsel %vm240_vm1, %v231_v1, 0.0  ;;  %v263_v22 = vsel %vm240_vm1, %v237_v2, 0.0 }
  0xf1   :  { %v244_v12 = vsel %vm240_vm1, %v230_v5, 0.0  ;;  %v261_v13 = vsel %vm240_vm1, %v236_v6, 0.0  ;;  %v215_v14 = vmax.f32 %v177_v7, 0.0  ;;  %v221_v15 = vmax.f32 %v207_v8, 0.0 }
  0xf2   :  { %v245_v17 = vadd.f32 %v244_v12, %v243_v63  ;;  %v262_v18 = vadd.f32 %v261_v13, %v260_v0  ;;  %v214_v19 = vmax.f32 %v172_v10, 0.0  ;;  %v220_v20 = vmax.f32 %v202_v11, 0.0 }
  0xf3   :  { %v233_v23 = vmul.f32 %v227_v9, %v215_v14  ;;  %v239_v24 = vmul.f32 %v227_v9, %v221_v15 }
  0xf4   :  { %v232_v25 = vmul.f32 %v226_v16, %v214_v19  ;;  %v247_v26 = vadd.f32 %v246_v21, %v245_v17  ;;  %v238_v27 = vmul.f32 %v226_v16, %v220_v20  ;;  %v264_v28 = vadd.f32 %v263_v22, %v262_v18 }
  0xf5   :  { %v250_v33 = vsel %vm240_vm1, %v233_v23, 0.0  ;;  %v267_v34 = vsel %vm240_vm1, %v239_v24, 0.0 }
  0xf6   :  { %v248_v29 = vsel %vm240_vm1, %v232_v25, 0.0  ;;  %v265_v30 = vsel %vm240_vm1, %v238_v27, 0.0 }
  0xf7   :  { %v249_v31 = vadd.f32 %v248_v29, %v247_v26  ;;  %v266_v32 = vadd.f32 %v265_v30, %v264_v28 }
  0xf9   :  { %v251_v35 = vadd.f32 %v250_v33, %v249_v31  ;;  %v268_v36 = vadd.f32 %v267_v34, %v266_v32 }
  0xfb   :  { %v252_v37 = vrot.slane %v251_v35, 4  ;;  %v269_v38 = vrot.slane %v268_v36, 4 }
  0xfd   :  { %v253_v39 = vadd.f32 %v252_v37, %v251_v35  ;;  %v270_v40 = vadd.f32 %v269_v38, %v268_v36 }
  0xff   :  { %v254_v41 = vrot.slane %v253_v39, 2  ;;  %v271_v42 = vrot.slane %v270_v40, 2 }
 0x101   :  { %v255_v43 = vadd.f32 %v254_v41, %v253_v39  ;;  %v272_v44 = vadd.f32 %v271_v42, %v270_v40 }
 0x103   :  { %v256_v45 = vrot.slane %v255_v43, 1  ;;  %v273_v46 = vrot.slane %v272_v44, 1 }
 0x105   :  { %v257_v48 = vadd.f32 %v256_v45, %v255_v43  ;;  %v274_v49 = vadd.f32 %v273_v46, %v272_v44 }
 0x107   :  { %v285_v50 = vadd.f32 %v283_v47, %v257_v48  ;;  %v286_v51 = vadd.f32 %v283_v47, %v274_v49 }
 0x109   :  { %v287_v52 = vmax.f32 %v285_v50, 0.0  ;;  %v288_v53 = vmax.f32 %v286_v51, 0.0 }
 0x10b   :  { %v292_v54 = vsel %vm291_vm2, %v288_v53, %v287_v52 }
 0x10c   :  { %295 = vst.msk [vmem:[#allocation3] sm:$0x3] %vm294_vm3, %v292_v54 }
 0x10d   :  { %404 = shalt.err (!%p401_p4)
}
 0x10e   :  { %s405_s18 = scalar_lea.hbm %s568_s5, 32 }
 0x10f   :  { %p406_p5 = scmp.ne.s32.totalorder %s568_s5, %s405_s18  ;;  %p409_p6 = scmp.lt.u32.totalorder %s405_s18, %s568_s5 }
 0x111   :  { %p411_p7 = pnand %p409_p6, %p406_p5 }
 0x113   :  { %414 = shalt.err (!%p411_p7)
}
 0x114   :  { %305 = dma.vmem_to_hbm [thread:$0]  %s303_s14, 32, %s568_s5, [#allocation4]  }
 0x115   :  { %415 = dma.done.wait [#allocation4], 32  }
 0x116   :  { %416 = vsyncadd [#allocation4], 4294967264 }
 0x117   :  { %309 = vsyncpa [#allocation4], 1 }

</bundles_post_ra>
